<compile_context>
chip_gen: v6e
topology: v6e:2x2x1
jax: 0.10.0
libtpu: 0.0.40
codegen_flags: <defaults>
</compile_context>

<pallas_src>
import functools

import jax
import jax.numpy as jnp
from jax.experimental import pallas as pl
from jax.experimental.pallas import tpu as pltpu


_BN_EPS = 1e-5


# ---------------------------------------------------------------------------
# Fused ResBlock kernel
# ---------------------------------------------------------------------------
def _resblock_kernel(*refs, H, W, Hout, Wout, stride, proj):
    """One batch image per grid step; everything stays in VMEM.

    Layouts (all flat, channels on sublanes, spatial on lanes):
      x_ref   : (1, Cin, H*W)                 dense input image
      xbuf1   : (Cin, (H+2)*W + 2)            conv1 input, vertically padded
      rhs1    : (9*Cin, H*W)                  tap-stacked conv1 RHS
      hbuf2   : (Cout, (Hout+2)*Wout + 2)     conv2 input, vertically padded
      rhs2    : (9*Cout, Hout*Wout)           tap-stacked conv2 RHS
      o_ref   : (1, Cout, Hout*Wout)          dense output image
    Horizontal (left/right) padding of the 3x3 convs is realised by the
    0/1 edge masks applied to the kx==0 / kx==2 tap slabs.
    """
    (x_ref, w1_ref, s1_ref, b1_ref, w2_ref, s2_ref, b2_ref,
     ml1_ref, mr1_ref, ml2_ref, mr2_ref) = refs[:11]
    idx = 11
    sel_ref = None
    if stride > 1:
        sel_ref = refs[idx]
        idx += 1
    if proj:
        w3_ref, s3_ref, b3_ref = refs[idx:idx + 3]
        idx += 3
    o_ref = refs[idx]
    xbuf1_ref, rhs1_ref, hbuf2_ref, rhs2_ref = refs[idx + 1:idx + 5]

    cin = xbuf1_ref.shape[0]
    cout = hbuf2_ref.shape[0]
    L1 = H * W
    L2 = Hout * Wout
    mm_dtype = w1_ref.dtype          # bf16 (default) or f32 matmul operands

    # Zero the padded buffers every step: the borders must be zero and the
    # "parallel" batch axis may be split across TensorCores, so we cannot
    # rely on a program_id==0 one-time init.  ~tens of KB of VPU stores.
    xbuf1_ref[...] = jnp.zeros(xbuf1_ref.shape, xbuf1_ref.dtype)
    hbuf2_ref[...] = jnp.zeros(hbuf2_ref.shape, hbuf2_ref.dtype)

    xv_c = x_ref[0]                          # (Cin, H*W), compute dtype
    xv = xv_c.astype(jnp.float32)

    # conv1 input: dense x dropped into the vertically zero-padded flat
    # buffer with a single (lane-shifted) VMEM store.
    xbuf1_ref[:, W + 1:W + 1 + L1] = xv

    def build_rhs(src_ref, rhs_ref, c, row_w, n_cols, ml_ref, mr_ref):
        # Pack the 9 shifted tap views (edge-masked) along K.
        for ky in range(3):
            for kx in range(3):
                t = ky * 3 + kx
                off = ky * row_w + kx
                slab = src_ref[:, off:off + n_cols]
                if kx == 0:
                    slab = slab * ml_ref[...]
                elif kx == 2:
                    slab = slab * mr_ref[...]
                rhs_ref[t * c:(t + 1) * c, :] = slab

    # ---- conv1 + BN + ReLU: one MXU matmul, K = 9*Cin ----
    build_rhs(xbuf1_ref, rhs1_ref, cin, W, L1, ml1_ref, mr1_ref)
    acc1 = jnp.dot(w1_ref[...], rhs1_ref[...].astype(mm_dtype),
                   preferred_element_type=jnp.float32)          # (Cout, L1)
    h = jnp.maximum(acc1 * s1_ref[...] + b1_ref[...], 0.0)       # f32

    # ---- h into conv2's padded layout (stride folded in VMEM) ----
    if stride == 1:
        hbuf2_ref[:, Wout + 1:Wout + 1 + L2] = h
    else:
        # Strided spatial subsample as a tiny selection matmul.
        h_sub = jnp.dot(h.astype(mm_dtype), sel_ref[...],
                        preferred_element_type=jnp.float32)      # (Cout, L2)
        hbuf2_ref[:, Wout + 1:Wout + 1 + L2] = h_sub

    # ---- conv2 + BN: one MXU matmul, K = 9*Cout ----
    build_rhs(hbuf2_ref, rhs2_ref, cout, Wout, L2, ml2_ref, mr2_ref)
    acc2 = jnp.dot(w2_ref[...], rhs2_ref[...].astype(mm_dtype),
                   preferred_element_type=jnp.float32)          # (Cout, L2)
    y2 = acc2 * s2_ref[...] + b2_ref[...]

    # ---- shortcut branch (fused) ----
    if proj:
        if stride == 1:
            x_sub = xv_c
        else:
            x_sub = jnp.dot(xv_c, sel_ref[...],
                            preferred_element_type=jnp.float32).astype(mm_dtype)
        res = jnp.dot(w3_ref[...], x_sub,
                      preferred_element_type=jnp.float32)
        res = res * s3_ref[...] + b3_ref[...]                    # (Cout, L2)
    else:
        res = xv                                                 # identity

    # ---- residual add + final ReLU, single dense lane-wide store ----
    o_ref[0] = jnp.maximum(y2 + res, 0.0).astype(o_ref.dtype)


# ---------------------------------------------------------------------------
# Wrapper-side helpers (pure JAX, no materialising glue on activations)
# ---------------------------------------------------------------------------
def _fold_bn(gamma, beta, mean, var):
    scale = gamma / jnp.sqrt(var + _BN_EPS)
    bias = beta - mean * scale
    return (scale.reshape(-1, 1).astype(jnp.float32),
            bias.reshape(-1, 1).astype(jnp.float32))


def _stack_taps(w):
    # (Cout, Cin, 3, 3) -> (Cout, 9*Cin), column index = (ky*3 + kx)*Cin + ci
    cout, cin = w.shape[0], w.shape[1]
    return jnp.transpose(w, (0, 2, 3, 1)).reshape(cout, 9 * cin)


def resblock_forward(x, params, *, strides=1, same_shape=True,
                     compute_dtype=jnp.bfloat16):
    """Pallas implementation of ResBlock.forward (inference / eval-mode BN)."""
    B, Cin, H, W = map(int, x.shape)
    Cout = int(params["conv1_w"].shape[0])
    Hout = (H - 1) // strides + 1
    Wout = (W - 1) // strides + 1
    if same_shape:
        assert strides == 1 and Cout == Cin, \
            "same_shape=True requires stride 1 and equal channel counts"
    proj = not same_shape
    cd = compute_dtype

    s1, b1 = _fold_bn(params["bn1_gamma"], params["bn1_beta"],
                      params["bn1_mean"], params["bn1_var"])
    s2, b2 = _fold_bn(params["bn2_gamma"], params["bn2_beta"],
                      params["bn2_mean"], params["bn2_var"])
    w1s = _stack_taps(params["conv1_w"]).astype(cd)
    w2s = _stack_taps(params["conv2_w"]).astype(cd)

    # 0/1 horizontal-edge masks (output-position indexed), shared by all taps
    # with kx==0 (left pad) / kx==2 (right pad).
    col1 = jnp.arange(H * W, dtype=jnp.int32) % W
    ml1 = (col1 >= 1).astype(jnp.float32)[None, :]
    mr1 = (col1 <= W - 2).astype(jnp.float32)[None, :]
    col2 = jnp.arange(Hout * Wout, dtype=jnp.int32) % Wout
    ml2 = (col2 >= 1).astype(jnp.float32)[None, :]
    mr2 = (col2 <= Wout - 2).astype(jnp.float32)[None, :]

    x_flat = x.reshape(B, Cin, H * W).astype(cd)   # free reshape, bf16 read

    inputs = [x_flat, w1s, s1, b1, w2s, s2, b2, ml1, mr1, ml2, mr2]
    in_specs = [
        pl.BlockSpec((1, Cin, H * W), lambda i: (i, 0, 0)),
        pl.BlockSpec((Cout, 9 * Cin), lambda i: (0, 0)),
        pl.BlockSpec((Cout, 1), lambda i: (0, 0)),
        pl.BlockSpec((Cout, 1), lambda i: (0, 0)),
        pl.BlockSpec((Cout, 9 * Cout), lambda i: (0, 0)),
        pl.BlockSpec((Cout, 1), lambda i: (0, 0)),
        pl.BlockSpec((Cout, 1), lambda i: (0, 0)),
        pl.BlockSpec((1, H * W), lambda i: (0, 0)),
        pl.BlockSpec((1, H * W), lambda i: (0, 0)),
        pl.BlockSpec((1, Hout * Wout), lambda i: (0, 0)),
        pl.BlockSpec((1, Hout * Wout), lambda i: (0, 0)),
    ]

    if strides > 1:
        # Selection matrix picking the stride-s spatial grid (dense layouts).
        src = (jnp.arange(Hout, dtype=jnp.int32)[:, None] * strides * W
               + jnp.arange(Wout, dtype=jnp.int32)[None, :] * strides).reshape(-1)
        dst = jnp.arange(Hout * Wout, dtype=jnp.int32)
        sel = jnp.zeros((H * W, Hout * Wout), jnp.float32)
        sel = sel.at[src, dst].set(1.0).astype(cd)
        inputs.append(sel)
        in_specs.append(pl.BlockSpec((H * W, Hout * Wout), lambda i: (0, 0)))

    if proj:
        w3 = params["conv3_w"].reshape(Cout, Cin).astype(cd)
        s3, b3 = _fold_bn(params["bn3_gamma"], params["bn3_beta"],
                          params["bn3_mean"], params["bn3_var"])
        inputs += [w3, s3, b3]
        in_specs += [pl.BlockSpec((Cout, Cin), lambda i: (0, 0)),
                     pl.BlockSpec((Cout, 1), lambda i: (0, 0)),
                     pl.BlockSpec((Cout, 1), lambda i: (0, 0))]

    kernel = functools.partial(_resblock_kernel, H=H, W=W, Hout=Hout,
                               Wout=Wout, stride=strides, proj=proj)

    out = pl.pallas_call(
        kernel,
        out_shape=jax.ShapeDtypeStruct((B, Cout, Hout * Wout), jnp.float32),
        grid_spec=pltpu.PrefetchScalarGridSpec(
            num_scalar_prefetch=0,
            grid=(B,),
            in_specs=in_specs,
            out_specs=pl.BlockSpec((1, Cout, Hout * Wout),
                                   lambda i: (i, 0, 0)),
            scratch_shapes=[
                pltpu.VMEM((Cin, (H + 2) * W + 2), jnp.float32),
                pltpu.VMEM((9 * Cin, H * W), jnp.float32),
                pltpu.VMEM((Cout, (Hout + 2) * Wout + 2), jnp.float32),
                pltpu.VMEM((9 * Cout, Hout * Wout), jnp.float32),
            ],
        ),
        compiler_params=pltpu.CompilerParams(
            dimension_semantics=("parallel",)),
    )(*inputs)
    return out.reshape(B, Cout, Hout, Wout)


# ---------------------------------------------------------------------------
# Pure-JAX reference (faithful transcription of the PyTorch forward,
# eval-mode BN; optional input/weight cast to match the bf16 matmul path)
# ---------------------------------------------------------------------------
def resblock_reference(x, params, *, strides=1, same_shape=True,
                       compute_dtype=jnp.float32):
    cd = compute_dtype

    def conv(z, w, stride, pad):
        return jax.lax.conv_general_dilated(
            z.astype(cd), w.astype(cd), window_strides=(stride, stride),
            padding=((pad, pad), (pad, pad)),
            dimension_numbers=("NCHW", "OIHW", "NCHW"),
            preferred_element_type=jnp.float32)

    def bn(z, prefix):
        g = params[prefix + "_gamma"][None, :, None, None]
        b = params[prefix + "_beta"][None, :, None, None]
        m = params[prefix + "_mean"][None, :, None, None]
        v = params[prefix + "_var"][None, :, None, None]
        return (z - m) / jnp.sqrt(v + _BN_EPS) * g + b

    out = jnp.maximum(bn(conv(x, params["conv1_w"], strides, 1), "bn1"), 0.0)
    out = bn(conv(out, params["conv2_w"], 1, 1), "bn2")
    if same_shape:
        res = x.astype(cd).astype(jnp.float32)
    else:
        res = bn(conv(x, params["conv3_w"], strides, 0), "bn3")
    return jnp.maximum(out + res, 0.0)


# ---------------------------------------------------------------------------
# Demo / self-check
# ---------------------------------------------------------------------------
if __name__ == "__main__":
    def make_params(key, cin, cout, same_shape):
        ks = jax.random.split(key, 16)
        p = {
            "conv1_w": 0.2 * jax.random.normal(ks[0], (cout, cin, 3, 3), jnp.float32),
            "bn1_gamma": 1.0 + 0.1 * jax.random.normal(ks[1], (cout,), jnp.float32),
            "bn1_beta": 0.1 * jax.random.normal(ks[2], (cout,), jnp.float32),
            "bn1_mean": 0.1 * jax.random.normal(ks[3], (cout,), jnp.float32),
            "bn1_var": jax.random.uniform(ks[4], (cout,), jnp.float32, 0.5, 1.5),
            "conv2_w": 0.2 * jax.random.normal(ks[5], (cout, cout, 3, 3), jnp.float32),
            "bn2_gamma": 1.0 + 0.1 * jax.random.normal(ks[6], (cout,), jnp.float32),
            "bn2_beta": 0.1 * jax.random.normal(ks[7], (cout,), jnp.float32),
            "bn2_mean": 0.1 * jax.random.normal(ks[8], (cout,), jnp.float32),
            "bn2_var": jax.random.uniform(ks[9], (cout,), jnp.float32, 0.5, 1.5),
        }
        if not same_shape:
            p["conv3_w"] = 0.2 * jax.random.normal(ks[10], (cout, cin, 1, 1), jnp.float32)
            p["bn3_gamma"] = 1.0 + 0.1 * jax.random.normal(ks[11], (cout,), jnp.float32)
            p["bn3_beta"] = 0.1 * jax.random.normal(ks[12], (cout,), jnp.float32)
            p["bn3_mean"] = 0.1 * jax.random.normal(ks[13], (cout,), jnp.float32)
            p["bn3_var"] = jax.random.uniform(ks[14], (cout,), jnp.float32, 0.5, 1.5)
        return p

    key = jax.random.PRNGKey(0)
    k_x1, k_p1, k_x2, k_p2 = jax.random.split(key, 4)

    # ---- Case 1: identity shortcut, stride 1 ----
    B, C, H, W = 2, 8, 16, 16
    x1 = jax.random.normal(k_x1, (B, C, H, W), jnp.float32)
    p1 = make_params(k_p1, C, C, same_shape=True)

    out1 = jax.block_until_ready(
        resblock_forward(x1, p1, strides=1, same_shape=True,
                         compute_dtype=jnp.float32))
    ref1 = resblock_reference(x1, p1, strides=1, same_shape=True,
                              compute_dtype=jnp.float32)
    assert out1.shape == (B, C, H, W) and out1.dtype == jnp.float32
    assert jnp.allclose(out1, ref1, atol=5e-4, rtol=5e-4), \
        float(jnp.max(jnp.abs(out1 - ref1)))

    out1b = jax.block_until_ready(
        resblock_forward(x1, p1, strides=1, same_shape=True,
                         compute_dtype=jnp.bfloat16))
    ref1b = resblock_reference(x1, p1, strides=1, same_shape=True,
                               compute_dtype=jnp.bfloat16)
    assert jnp.allclose(out1b, ref1b, atol=2e-2, rtol=1e-2), \
        float(jnp.max(jnp.abs(out1b - ref1b)))

    # ---- Case 2: 1x1-conv/BN projection shortcut, stride 2, Cin!=Cout ----
    Cout = 16
    x2 = jax.random.normal(k_x2, (B, C, H, W), jnp.float32)
    p2 = make_params(k_p2, C, Cout, same_shape=False)

    out2 = jax.block_until_ready(
        resblock_forward(x2, p2, strides=2, same_shape=False,
                         compute_dtype=jnp.float32))
    ref2 = resblock_reference(x2, p2, strides=2, same_shape=False,
                              compute_dtype=jnp.float32)
    assert out2.shape == (B, Cout, H // 2, W // 2)
    # The in-VMEM stride subsample is a DEFAULT-precision matmul, so the f32
    # path can pick up ~bf16-level rounding of h / x vs. the exact f32
    # reference; the bf16 check below is the tight one for this config.
    assert jnp.allclose(out2, ref2, atol=5e-2, rtol=2e-2), \
        float(jnp.max(jnp.abs(out2 - ref2)))

    out2b = jax.block_until_ready(
        resblock_forward(x2, p2, strides=2, same_shape=False,
                         compute_dtype=jnp.bfloat16))
    ref2b = resblock_reference(x2, p2, strides=2, same_shape=False,
                               compute_dtype=jnp.bfloat16)
    assert jnp.allclose(out2b, ref2b, atol=2e-2, rtol=1e-2), \
        float(jnp.max(jnp.abs(out2b - ref2b)))

    print("KERNEL_OK")
</pallas_src>

<mosaic_0001>
module attributes {stable_mosaic.version = 11 : i64} {
  func.func @_resblock_kernel(%arg0: i32, %arg1: memref<1x8x256xf32, #tpu.memory_space<vmem>>, %arg2: memref<8x72xf32, #tpu.memory_space<vmem>>, %arg3: memref<8x1xf32, #tpu.memory_space<vmem>>, %arg4: memref<8x1xf32, #tpu.memory_space<vmem>>, %arg5: memref<8x72xf32, #tpu.memory_space<vmem>>, %arg6: memref<8x1xf32, #tpu.memory_space<vmem>>, %arg7: memref<8x1xf32, #tpu.memory_space<vmem>>, %arg8: memref<1x256xf32, #tpu.memory_space<vmem>>, %arg9: memref<1x256xf32, #tpu.memory_space<vmem>>, %arg10: memref<1x256xf32, #tpu.memory_space<vmem>>, %arg11: memref<1x256xf32, #tpu.memory_space<vmem>>, %arg12: memref<1x8x256xf32, #tpu.memory_space<vmem>>, %arg13: memref<8x290xf32, #tpu.memory_space<vmem>>, %arg14: memref<72x256xf32, #tpu.memory_space<vmem>>, %arg15: memref<8x290xf32, #tpu.memory_space<vmem>>, %arg16: memref<72x256xf32, #tpu.memory_space<vmem>>) attributes {dimension_semantics = [#tpu.dimension_semantics<parallel>], iteration_bounds = array<i64: 2>, scalar_prefetch = 0 : i64, scratch_operands = 4 : i64, tpu.core_type = #tpu.core_type<tc>, window_params = [{transform_indices = @transform_0, window_bounds = array<i64: 1, 8, 256>}, {pipeline_mode = #tpu.pipeline_mode<synchronous>, transform_indices = @transform_1, window_bounds = array<i64: 8, 72>}, {pipeline_mode = #tpu.pipeline_mode<synchronous>, transform_indices = @transform_2, window_bounds = array<i64: 8, 1>}, {pipeline_mode = #tpu.pipeline_mode<synchronous>, transform_indices = @transform_3, window_bounds = array<i64: 8, 1>}, {pipeline_mode = #tpu.pipeline_mode<synchronous>, transform_indices = @transform_4, window_bounds = array<i64: 8, 72>}, {pipeline_mode = #tpu.pipeline_mode<synchronous>, transform_indices = @transform_5, window_bounds = array<i64: 8, 1>}, {pipeline_mode = #tpu.pipeline_mode<synchronous>, transform_indices = @transform_6, window_bounds = array<i64: 8, 1>}, {pipeline_mode = #tpu.pipeline_mode<synchronous>, transform_indices = @transform_7, window_bounds = array<i64: 1, 256>}, {pipeline_mode = #tpu.pipeline_mode<synchronous>, transform_indices = @transform_8, window_bounds = array<i64: 1, 256>}, {pipeline_mode = #tpu.pipeline_mode<synchronous>, transform_indices = @transform_9, window_bounds = array<i64: 1, 256>}, {pipeline_mode = #tpu.pipeline_mode<synchronous>, transform_indices = @transform_10, window_bounds = array<i64: 1, 256>}, {transform_indices = @transform_11, window_bounds = array<i64: 1, 8, 256>}]} {
    %cst = arith.constant 0.000000e+00 : f32
    %0 = vector.broadcast %cst : f32 to vector<8x290xf32>
    %c0 = arith.constant 0 : index
    %c0_0 = arith.constant 0 : index
    %1 = vector.load %arg13[%c0, %c0_0] : memref<8x290xf32, #tpu.memory_space<vmem>>, vector<8x290xf32>
    tpu.vector_store %arg13[%c0, %c0_0], %0 {strides = array<i32>} : memref<8x290xf32, #tpu.memory_space<vmem>>, vector<8x290xf32>,
    %cst_1 = arith.constant 0.000000e+00 : f32
    %2 = vector.broadcast %cst_1 : f32 to vector<8x290xf32>
    %c0_2 = arith.constant 0 : index
    %c0_3 = arith.constant 0 : index
    %3 = vector.load %arg15[%c0_2, %c0_3] : memref<8x290xf32, #tpu.memory_space<vmem>>, vector<8x290xf32>
    tpu.vector_store %arg15[%c0_2, %c0_3], %2 {strides = array<i32>} : memref<8x290xf32, #tpu.memory_space<vmem>>, vector<8x290xf32>,
    %c0_4 = arith.constant 0 : index
    %c0_5 = arith.constant 0 : index
    %c0_6 = arith.constant 0 : index
    %4 = vector.load %arg1[%c0_4, %c0_5, %c0_6] : memref<1x8x256xf32, #tpu.memory_space<vmem>>, vector<1x8x256xf32>
    %5 = vector.shape_cast %4 : vector<1x8x256xf32> to vector<8x256xf32>
    %c0_7 = arith.constant 0 : index
    %c17 = arith.constant 17 : index
    %6 = vector.load %arg13[%c0_7, %c17] : memref<8x290xf32, #tpu.memory_space<vmem>>, vector<8x256xf32>
    tpu.vector_store %arg13[%c0_7, %c17], %5 {strides = array<i32>} : memref<8x290xf32, #tpu.memory_space<vmem>>, vector<8x256xf32>,
    %c0_8 = arith.constant 0 : index
    %c0_9 = arith.constant 0 : index
    %7 = vector.load %arg13[%c0_8, %c0_9] : memref<8x290xf32, #tpu.memory_space<vmem>>, vector<8x256xf32>
    %c0_10 = arith.constant 0 : index
    %c0_11 = arith.constant 0 : index
    %8 = vector.load %arg8[%c0_10, %c0_11] : memref<1x256xf32, #tpu.memory_space<vmem>>, vector<1x256xf32>
    %9 = vector.broadcast %8 : vector<1x256xf32> to vector<8x256xf32>
    %10 = arith.mulf %7, %9 : vector<8x256xf32>
    %c0_12 = arith.constant 0 : index
    %c0_13 = arith.constant 0 : index
    %11 = vector.load %arg14[%c0_12, %c0_13] : memref<72x256xf32, #tpu.memory_space<vmem>>, vector<8x256xf32>
    tpu.vector_store %arg14[%c0_12, %c0_13], %10 {strides = array<i32>} : memref<72x256xf32, #tpu.memory_space<vmem>>, vector<8x256xf32>,
    %c0_14 = arith.constant 0 : index
    %c1 = arith.constant 1 : index
    %12 = vector.load %arg13[%c0_14, %c1] : memref<8x290xf32, #tpu.memory_space<vmem>>, vector<8x256xf32>
    %c8 = arith.constant 8 : index
    %c0_15 = arith.constant 0 : index
    %13 = vector.load %arg14[%c8, %c0_15] : memref<72x256xf32, #tpu.memory_space<vmem>>, vector<8x256xf32>
    tpu.vector_store %arg14[%c8, %c0_15], %12 {strides = array<i32>} : memref<72x256xf32, #tpu.memory_space<vmem>>, vector<8x256xf32>,
    %c0_16 = arith.constant 0 : index
    %c2 = arith.constant 2 : index
    %14 = vector.load %arg13[%c0_16, %c2] : memref<8x290xf32, #tpu.memory_space<vmem>>, vector<8x256xf32>
    %c0_17 = arith.constant 0 : index
    %c0_18 = arith.constant 0 : index
    %15 = vector.load %arg9[%c0_17, %c0_18] : memref<1x256xf32, #tpu.memory_space<vmem>>, vector<1x256xf32>
    %16 = vector.broadcast %15 : vector<1x256xf32> to vector<8x256xf32>
    %17 = arith.mulf %14, %16 : vector<8x256xf32>
    %c16 = arith.constant 16 : index
    %c0_19 = arith.constant 0 : index
    %18 = vector.load %arg14[%c16, %c0_19] : memref<72x256xf32, #tpu.memory_space<vmem>>, vector<8x256xf32>
    tpu.vector_store %arg14[%c16, %c0_19], %17 {strides = array<i32>} : memref<72x256xf32, #tpu.memory_space<vmem>>, vector<8x256xf32>,
    %c0_20 = arith.constant 0 : index
    %c16_21 = arith.constant 16 : index
    %19 = vector.load %arg13[%c0_20, %c16_21] : memref<8x290xf32, #tpu.memory_space<vmem>>, vector<8x256xf32>
    %c0_22 = arith.constant 0 : index
    %c0_23 = arith.constant 0 : index
    %20 = vector.load %arg8[%c0_22, %c0_23] : memref<1x256xf32, #tpu.memory_space<vmem>>, vector<1x256xf32>
    %21 = vector.broadcast %20 : vector<1x256xf32> to vector<8x256xf32>
    %22 = arith.mulf %19, %21 : vector<8x256xf32>
    %c24 = arith.constant 24 : index
    %c0_24 = arith.constant 0 : index
    %23 = vector.load %arg14[%c24, %c0_24] : memref<72x256xf32, #tpu.memory_space<vmem>>, vector<8x256xf32>
    tpu.vector_store %arg14[%c24, %c0_24], %22 {strides = array<i32>} : memref<72x256xf32, #tpu.memory_space<vmem>>, vector<8x256xf32>,
    %c0_25 = arith.constant 0 : index
    %c17_26 = arith.constant 17 : index
    %24 = vector.load %arg13[%c0_25, %c17_26] : memref<8x290xf32, #tpu.memory_space<vmem>>, vector<8x256xf32>
    %c32 = arith.constant 32 : index
    %c0_27 = arith.constant 0 : index
    %25 = vector.load %arg14[%c32, %c0_27] : memref<72x256xf32, #tpu.memory_space<vmem>>, vector<8x256xf32>
    tpu.vector_store %arg14[%c32, %c0_27], %24 {strides = array<i32>} : memref<72x256xf32, #tpu.memory_space<vmem>>, vector<8x256xf32>,
    %c0_28 = arith.constant 0 : index
    %c18 = arith.constant 18 : index
    %26 = vector.load %arg13[%c0_28, %c18] : memref<8x290xf32, #tpu.memory_space<vmem>>, vector<8x256xf32>
    %c0_29 = arith.constant 0 : index
    %c0_30 = arith.constant 0 : index
    %27 = vector.load %arg9[%c0_29, %c0_30] : memref<1x256xf32, #tpu.memory_space<vmem>>, vector<1x256xf32>
    %28 = vector.broadcast %27 : vector<1x256xf32> to vector<8x256xf32>
    %29 = arith.mulf %26, %28 : vector<8x256xf32>
    %c40 = arith.constant 40 : index
    %c0_31 = arith.constant 0 : index
    %30 = vector.load %arg14[%c40, %c0_31] : memref<72x256xf32, #tpu.memory_space<vmem>>, vector<8x256xf32>
    tpu.vector_store %arg14[%c40, %c0_31], %29 {strides = array<i32>} : memref<72x256xf32, #tpu.memory_space<vmem>>, vector<8x256xf32>,
    %c0_32 = arith.constant 0 : index
    %c32_33 = arith.constant 32 : index
    %31 = vector.load %arg13[%c0_32, %c32_33] : memref<8x290xf32, #tpu.memory_space<vmem>>, vector<8x256xf32>
    %c0_34 = arith.constant 0 : index
    %c0_35 = arith.constant 0 : index
    %32 = vector.load %arg8[%c0_34, %c0_35] : memref<1x256xf32, #tpu.memory_space<vmem>>, vector<1x256xf32>
    %33 = vector.broadcast %32 : vector<1x256xf32> to vector<8x256xf32>
    %34 = arith.mulf %31, %33 : vector<8x256xf32>
    %c48 = arith.constant 48 : index
    %c0_36 = arith.constant 0 : index
    %35 = vector.load %arg14[%c48, %c0_36] : memref<72x256xf32, #tpu.memory_space<vmem>>, vector<8x256xf32>
    tpu.vector_store %arg14[%c48, %c0_36], %34 {strides = array<i32>} : memref<72x256xf32, #tpu.memory_space<vmem>>, vector<8x256xf32>,
    %c0_37 = arith.constant 0 : index
    %c33 = arith.constant 33 : index
    %36 = vector.load %arg13[%c0_37, %c33] : memref<8x290xf32, #tpu.memory_space<vmem>>, vector<8x256xf32>
    %c56 = arith.constant 56 : index
    %c0_38 = arith.constant 0 : index
    %37 = vector.load %arg14[%c56, %c0_38] : memref<72x256xf32, #tpu.memory_space<vmem>>, vector<8x256xf32>
    tpu.vector_store %arg14[%c56, %c0_38], %36 {strides = array<i32>} : memref<72x256xf32, #tpu.memory_space<vmem>>, vector<8x256xf32>,
    %c0_39 = arith.constant 0 : index
    %c34 = arith.constant 34 : index
    %38 = vector.load %arg13[%c0_39, %c34] : memref<8x290xf32, #tpu.memory_space<vmem>>, vector<8x256xf32>
    %c0_40 = arith.constant 0 : index
    %c0_41 = arith.constant 0 : index
    %39 = vector.load %arg9[%c0_40, %c0_41] : memref<1x256xf32, #tpu.memory_space<vmem>>, vector<1x256xf32>
    %40 = vector.broadcast %39 : vector<1x256xf32> to vector<8x256xf32>
    %41 = arith.mulf %38, %40 : vector<8x256xf32>
    %c64 = arith.constant 64 : index
    %c0_42 = arith.constant 0 : index
    %42 = vector.load %arg14[%c64, %c0_42] : memref<72x256xf32, #tpu.memory_space<vmem>>, vector<8x256xf32>
    tpu.vector_store %arg14[%c64, %c0_42], %41 {strides = array<i32>} : memref<72x256xf32, #tpu.memory_space<vmem>>, vector<8x256xf32>,
    %c0_43 = arith.constant 0 : index
    %c0_44 = arith.constant 0 : index
    %43 = vector.load %arg2[%c0_43, %c0_44] : memref<8x72xf32, #tpu.memory_space<vmem>>, vector<8x72xf32>
    %c0_45 = arith.constant 0 : index
    %c0_46 = arith.constant 0 : index
    %44 = vector.load %arg14[%c0_45, %c0_46] : memref<72x256xf32, #tpu.memory_space<vmem>>, vector<72x256xf32>
    %cst_47 = arith.constant dense<0.000000e+00> : vector<8x256xf32>
    %45 = tpu.matmul %43, %44, %cst_47 {dimension_numbers = #tpu.dot_dimension_numbers<[1], [0], [0], [1], [0, 0, 1, 1], [], []>} : vector<8x72xf32>, vector<72x256xf32>, vector<8x256xf32> -> vector<8x256xf32>
    %c0_48 = arith.constant 0 : index
    %c0_49 = arith.constant 0 : index
    %46 = vector.load %arg3[%c0_48, %c0_49] : memref<8x1xf32, #tpu.memory_space<vmem>>, vector<8x1xf32>
    %47 = vector.broadcast %46 : vector<8x1xf32> to vector<8x256xf32>
    %48 = arith.mulf %45, %47 : vector<8x256xf32>
    %c0_50 = arith.constant 0 : index
    %c0_51 = arith.constant 0 : index
    %49 = vector.load %arg4[%c0_50, %c0_51] : memref<8x1xf32, #tpu.memory_space<vmem>>, vector<8x1xf32>
    %50 = vector.broadcast %49 : vector<8x1xf32> to vector<8x256xf32>
    %51 = arith.addf %48, %50 : vector<8x256xf32>
    %cst_52 = arith.constant 0.000000e+00 : f32
    %52 = vector.broadcast %cst_52 : f32 to vector<8x256xf32>
    %53 = arith.maximumf %51, %52 : vector<8x256xf32>
    %c0_53 = arith.constant 0 : index
    %c17_54 = arith.constant 17 : index
    %54 = vector.load %arg15[%c0_53, %c17_54] : memref<8x290xf32, #tpu.memory_space<vmem>>, vector<8x256xf32>
    tpu.vector_store %arg15[%c0_53, %c17_54], %53 {strides = array<i32>} : memref<8x290xf32, #tpu.memory_space<vmem>>, vector<8x256xf32>,
    %c0_55 = arith.constant 0 : index
    %c0_56 = arith.constant 0 : index
    %55 = vector.load %arg15[%c0_55, %c0_56] : memref<8x290xf32, #tpu.memory_space<vmem>>, vector<8x256xf32>
    %c0_57 = arith.constant 0 : index
    %c0_58 = arith.constant 0 : index
    %56 = vector.load %arg10[%c0_57, %c0_58] : memref<1x256xf32, #tpu.memory_space<vmem>>, vector<1x256xf32>
    %57 = vector.broadcast %56 : vector<1x256xf32> to vector<8x256xf32>
    %58 = arith.mulf %55, %57 : vector<8x256xf32>
    %c0_59 = arith.constant 0 : index
    %c0_60 = arith.constant 0 : index
    %59 = vector.load %arg16[%c0_59, %c0_60] : memref<72x256xf32, #tpu.memory_space<vmem>>, vector<8x256xf32>
    tpu.vector_store %arg16[%c0_59, %c0_60], %58 {strides = array<i32>} : memref<72x256xf32, #tpu.memory_space<vmem>>, vector<8x256xf32>,
    %c0_61 = arith.constant 0 : index
    %c1_62 = arith.constant 1 : index
    %60 = vector.load %arg15[%c0_61, %c1_62] : memref<8x290xf32, #tpu.memory_space<vmem>>, vector<8x256xf32>
    %c8_63 = arith.constant 8 : index
    %c0_64 = arith.constant 0 : index
    %61 = vector.load %arg16[%c8_63, %c0_64] : memref<72x256xf32, #tpu.memory_space<vmem>>, vector<8x256xf32>
    tpu.vector_store %arg16[%c8_63, %c0_64], %60 {strides = array<i32>} : memref<72x256xf32, #tpu.memory_space<vmem>>, vector<8x256xf32>,
    %c0_65 = arith.constant 0 : index
    %c2_66 = arith.constant 2 : index
    %62 = vector.load %arg15[%c0_65, %c2_66] : memref<8x290xf32, #tpu.memory_space<vmem>>, vector<8x256xf32>
    %c0_67 = arith.constant 0 : index
    %c0_68 = arith.constant 0 : index
    %63 = vector.load %arg11[%c0_67, %c0_68] : memref<1x256xf32, #tpu.memory_space<vmem>>, vector<1x256xf32>
    %64 = vector.broadcast %63 : vector<1x256xf32> to vector<8x256xf32>
    %65 = arith.mulf %62, %64 : vector<8x256xf32>
    %c16_69 = arith.constant 16 : index
    %c0_70 = arith.constant 0 : index
    %66 = vector.load %arg16[%c16_69, %c0_70] : memref<72x256xf32, #tpu.memory_space<vmem>>, vector<8x256xf32>
    tpu.vector_store %arg16[%c16_69, %c0_70], %65 {strides = array<i32>} : memref<72x256xf32, #tpu.memory_space<vmem>>, vector<8x256xf32>,
    %c0_71 = arith.constant 0 : index
    %c16_72 = arith.constant 16 : index
    %67 = vector.load %arg15[%c0_71, %c16_72] : memref<8x290xf32, #tpu.memory_space<vmem>>, vector<8x256xf32>
    %c0_73 = arith.constant 0 : index
    %c0_74 = arith.constant 0 : index
    %68 = vector.load %arg10[%c0_73, %c0_74] : memref<1x256xf32, #tpu.memory_space<vmem>>, vector<1x256xf32>
    %69 = vector.broadcast %68 : vector<1x256xf32> to vector<8x256xf32>
    %70 = arith.mulf %67, %69 : vector<8x256xf32>
    %c24_75 = arith.constant 24 : index
    %c0_76 = arith.constant 0 : index
    %71 = vector.load %arg16[%c24_75, %c0_76] : memref<72x256xf32, #tpu.memory_space<vmem>>, vector<8x256xf32>
    tpu.vector_store %arg16[%c24_75, %c0_76], %70 {strides = array<i32>} : memref<72x256xf32, #tpu.memory_space<vmem>>, vector<8x256xf32>,
    %c0_77 = arith.constant 0 : index
    %c17_78 = arith.constant 17 : index
    %72 = vector.load %arg15[%c0_77, %c17_78] : memref<8x290xf32, #tpu.memory_space<vmem>>, vector<8x256xf32>
    %c32_79 = arith.constant 32 : index
    %c0_80 = arith.constant 0 : index
    %73 = vector.load %arg16[%c32_79, %c0_80] : memref<72x256xf32, #tpu.memory_space<vmem>>, vector<8x256xf32>
    tpu.vector_store %arg16[%c32_79, %c0_80], %72 {strides = array<i32>} : memref<72x256xf32, #tpu.memory_space<vmem>>, vector<8x256xf32>,
    %c0_81 = arith.constant 0 : index
    %c18_82 = arith.constant 18 : index
    %74 = vector.load %arg15[%c0_81, %c18_82] : memref<8x290xf32, #tpu.memory_space<vmem>>, vector<8x256xf32>
    %c0_83 = arith.constant 0 : index
    %c0_84 = arith.constant 0 : index
    %75 = vector.load %arg11[%c0_83, %c0_84] : memref<1x256xf32, #tpu.memory_space<vmem>>, vector<1x256xf32>
    %76 = vector.broadcast %75 : vector<1x256xf32> to vector<8x256xf32>
    %77 = arith.mulf %74, %76 : vector<8x256xf32>
    %c40_85 = arith.constant 40 : index
    %c0_86 = arith.constant 0 : index
    %78 = vector.load %arg16[%c40_85, %c0_86] : memref<72x256xf32, #tpu.memory_space<vmem>>, vector<8x256xf32>
    tpu.vector_store %arg16[%c40_85, %c0_86], %77 {strides = array<i32>} : memref<72x256xf32, #tpu.memory_space<vmem>>, vector<8x256xf32>,
    %c0_87 = arith.constant 0 : index
    %c32_88 = arith.constant 32 : index
    %79 = vector.load %arg15[%c0_87, %c32_88] : memref<8x290xf32, #tpu.memory_space<vmem>>, vector<8x256xf32>
    %c0_89 = arith.constant 0 : index
    %c0_90 = arith.constant 0 : index
    %80 = vector.load %arg10[%c0_89, %c0_90] : memref<1x256xf32, #tpu.memory_space<vmem>>, vector<1x256xf32>
    %81 = vector.broadcast %80 : vector<1x256xf32> to vector<8x256xf32>
    %82 = arith.mulf %79, %81 : vector<8x256xf32>
    %c48_91 = arith.constant 48 : index
    %c0_92 = arith.constant 0 : index
    %83 = vector.load %arg16[%c48_91, %c0_92] : memref<72x256xf32, #tpu.memory_space<vmem>>, vector<8x256xf32>
    tpu.vector_store %arg16[%c48_91, %c0_92], %82 {strides = array<i32>} : memref<72x256xf32, #tpu.memory_space<vmem>>, vector<8x256xf32>,
    %c0_93 = arith.constant 0 : index
    %c33_94 = arith.constant 33 : index
    %84 = vector.load %arg15[%c0_93, %c33_94] : memref<8x290xf32, #tpu.memory_space<vmem>>, vector<8x256xf32>
    %c56_95 = arith.constant 56 : index
    %c0_96 = arith.constant 0 : index
    %85 = vector.load %arg16[%c56_95, %c0_96] : memref<72x256xf32, #tpu.memory_space<vmem>>, vector<8x256xf32>
    tpu.vector_store %arg16[%c56_95, %c0_96], %84 {strides = array<i32>} : memref<72x256xf32, #tpu.memory_space<vmem>>, vector<8x256xf32>,
    %c0_97 = arith.constant 0 : index
    %c34_98 = arith.constant 34 : index
    %86 = vector.load %arg15[%c0_97, %c34_98] : memref<8x290xf32, #tpu.memory_space<vmem>>, vector<8x256xf32>
    %c0_99 = arith.constant 0 : index
    %c0_100 = arith.constant 0 : index
    %87 = vector.load %arg11[%c0_99, %c0_100] : memref<1x256xf32, #tpu.memory_space<vmem>>, vector<1x256xf32>
    %88 = vector.broadcast %87 : vector<1x256xf32> to vector<8x256xf32>
    %89 = arith.mulf %86, %88 : vector<8x256xf32>
    %c64_101 = arith.constant 64 : index
    %c0_102 = arith.constant 0 : index
    %90 = vector.load %arg16[%c64_101, %c0_102] : memref<72x256xf32, #tpu.memory_space<vmem>>, vector<8x256xf32>
    tpu.vector_store %arg16[%c64_101, %c0_102], %89 {strides = array<i32>} : memref<72x256xf32, #tpu.memory_space<vmem>>, vector<8x256xf32>,
    %c0_103 = arith.constant 0 : index
    %c0_104 = arith.constant 0 : index
    %91 = vector.load %arg5[%c0_103, %c0_104] : memref<8x72xf32, #tpu.memory_space<vmem>>, vector<8x72xf32>
    %c0_105 = arith.constant 0 : index
    %c0_106 = arith.constant 0 : index
    %92 = vector.load %arg16[%c0_105, %c0_106] : memref<72x256xf32, #tpu.memory_space<vmem>>, vector<72x256xf32>
    %cst_107 = arith.constant dense<0.000000e+00> : vector<8x256xf32>
    %93 = tpu.matmul %91, %92, %cst_107 {dimension_numbers = #tpu.dot_dimension_numbers<[1], [0], [0], [1], [0, 0, 1, 1], [], []>} : vector<8x72xf32>, vector<72x256xf32>, vector<8x256xf32> -> vector<8x256xf32>
    %c0_108 = arith.constant 0 : index
    %c0_109 = arith.constant 0 : index
    %94 = vector.load %arg6[%c0_108, %c0_109] : memref<8x1xf32, #tpu.memory_space<vmem>>, vector<8x1xf32>
    %95 = vector.broadcast %94 : vector<8x1xf32> to vector<8x256xf32>
    %96 = arith.mulf %93, %95 : vector<8x256xf32>
    %c0_110 = arith.constant 0 : index
    %c0_111 = arith.constant 0 : index
    %97 = vector.load %arg7[%c0_110, %c0_111] : memref<8x1xf32, #tpu.memory_space<vmem>>, vector<8x1xf32>
    %98 = vector.broadcast %97 : vector<8x1xf32> to vector<8x256xf32>
    %99 = arith.addf %96, %98 : vector<8x256xf32>
    %100 = arith.addf %99, %5 : vector<8x256xf32>
    %cst_112 = arith.constant 0.000000e+00 : f32
    %101 = vector.broadcast %cst_112 : f32 to vector<8x256xf32>
    %102 = arith.maximumf %100, %101 : vector<8x256xf32>
    %c0_113 = arith.constant 0 : index
    %c0_114 = arith.constant 0 : index
    %c0_115 = arith.constant 0 : index
    %103 = vector.load %arg12[%c0_113, %c0_114, %c0_115] : memref<1x8x256xf32, #tpu.memory_space<vmem>>, vector<1x8x256xf32>
    %104 = vector.shape_cast %103 : vector<1x8x256xf32> to vector<8x256xf32>
    %105 = vector.shape_cast %102 : vector<8x256xf32> to vector<1x8x256xf32>
    tpu.vector_store %arg12[%c0_113, %c0_114, %c0_115], %105 {strides = array<i32>} : memref<1x8x256xf32, #tpu.memory_space<vmem>>, vector<1x8x256xf32>,
    return
  }
  func.func @transform_0(%arg0: i32) -> (i32, i32, i32) {
    %c0_i32 = arith.constant 0 : i32
    %c0_i32_0 = arith.constant 0 : i32
    %c0_i32_1 = arith.constant 0 : i32
    return %arg0, %c0_i32, %c0_i32_0 : i32, i32, i32
  }
  func.func @transform_1(%arg0: i32) -> (i32, i32) {
    %c0_i32 = arith.constant 0 : i32
    %c0_i32_0 = arith.constant 0 : i32
    %c0_i32_1 = arith.constant 0 : i32
    return %c0_i32, %c0_i32_0 : i32, i32
  }
  func.func @transform_2(%arg0: i32) -> (i32, i32) {
    %c0_i32 = arith.constant 0 : i32
    %c0_i32_0 = arith.constant 0 : i32
    %c0_i32_1 = arith.constant 0 : i32
    return %c0_i32, %c0_i32_0 : i32, i32
  }
  func.func @transform_3(%arg0: i32) -> (i32, i32) {
    %c0_i32 = arith.constant 0 : i32
    %c0_i32_0 = arith.constant 0 : i32
    %c0_i32_1 = arith.constant 0 : i32
    return %c0_i32, %c0_i32_0 : i32, i32
  }
  func.func @transform_4(%arg0: i32) -> (i32, i32) {
    %c0_i32 = arith.constant 0 : i32
    %c0_i32_0 = arith.constant 0 : i32
    %c0_i32_1 = arith.constant 0 : i32
    return %c0_i32, %c0_i32_0 : i32, i32
  }
  func.func @transform_5(%arg0: i32) -> (i32, i32) {
    %c0_i32 = arith.constant 0 : i32
    %c0_i32_0 = arith.constant 0 : i32
    %c0_i32_1 = arith.constant 0 : i32
    return %c0_i32, %c0_i32_0 : i32, i32
  }
  func.func @transform_6(%arg0: i32) -> (i32, i32) {
    %c0_i32 = arith.constant 0 : i32
    %c0_i32_0 = arith.constant 0 : i32
    %c0_i32_1 = arith.constant 0 : i32
    return %c0_i32, %c0_i32_0 : i32, i32
  }
  func.func @transform_7(%arg0: i32) -> (i32, i32) {
    %c0_i32 = arith.constant 0 : i32
    %c0_i32_0 = arith.constant 0 : i32
    %c0_i32_1 = arith.constant 0 : i32
    return %c0_i32, %c0_i32_0 : i32, i32
  }
  func.func @transform_8(%arg0: i32) -> (i32, i32) {
    %c0_i32 = arith.constant 0 : i32
    %c0_i32_0 = arith.constant 0 : i32
    %c0_i32_1 = arith.constant 0 : i32
    return %c0_i32, %c0_i32_0 : i32, i32
  }
  func.func @transform_9(%arg0: i32) -> (i32, i32) {
    %c0_i32 = arith.constant 0 : i32
    %c0_i32_0 = arith.constant 0 : i32
    %c0_i32_1 = arith.constant 0 : i32
    return %c0_i32, %c0_i32_0 : i32, i32
  }
  func.func @transform_10(%arg0: i32) -> (i32, i32) {
    %c0_i32 = arith.constant 0 : i32
    %c0_i32_0 = arith.constant 0 : i32
    %c0_i32_1 = arith.constant 0 : i32
    return %c0_i32, %c0_i32_0 : i32, i32
  }
  func.func @transform_11(%arg0: i32) -> (i32, i32, i32) {
    %c0_i32 = arith.constant 0 : i32
    %c0_i32_0 = arith.constant 0 : i32
    %c0_i32_1 = arith.constant 0 : i32
    return %arg0, %c0_i32, %c0_i32_0 : i32, i32, i32
  }
}

</mosaic_0001>

<bundles_post_ra>
// kernel: tpu_custom_call.1
= control target key start
LH: loop header
LB: loop body
LE: loop exit
PB: predicated region body
PF: predicated region fallthrough
CT: control target
= control target key end

     0   :  { %s1920_s0 = inlined_call_operand.vmem [shape: f32[2,8,256], index: 0, kind: input, shape index: {}]   ;;  %s1921_s1 = inlined_call_operand.hbm [shape: f32[8,72], index: 1, kind: input, shape index: {}]   ;;  %s1922_s2 = inlined_call_operand.vmem [shape: f32[8,1], index: 2, kind: input, shape index: {}]   ;;  %s1923_s3 = inlined_call_operand.vmem [shape: f32[8,1], index: 3, kind: input, shape index: {}]   ;;  %s1924_s4 = inlined_call_operand.vmem [shape: f32[8,72], index: 4, kind: input, shape index: {}]   ;;  %s1925_s5 = inlined_call_operand.vmem [shape: f32[8,1], index: 5, kind: input, shape index: {}]   ;;  %s1926_s6 = inlined_call_operand.vmem [shape: f32[8,1], index: 6, kind: input, shape index: {}]   ;;  %s1927_s7 = inlined_call_operand.vmem [shape: f32[1,256], index: 7, kind: input, shape index: {}]   ;;  %s1928_s8 = inlined_call_operand.vmem [shape: f32[1,256], index: 8, kind: input, shape index: {}]   ;;  %s1929_s9 = inlined_call_operand.vmem [shape: f32[1,256], index: 9, kind: input, shape index: {}]   ;;  %s1930_s10 = inlined_call_operand.vmem [shape: f32[1,256], index: 10, kind: input, shape index: {}]   ;;  %s1931_s11 = inlined_call_operand.hbm [shape: f32[2,8,256], index: 11, kind: output, shape index: {}]  }
   0x1   :  { %1948 = sst [smem:[#allocation12_spill]] %s1920_s0 }
   0x2   :  { %1949 = sst [smem:[#allocation13_spill]] %s1921_s1 }
   0x3   :  { %16 = vsyncpa [#allocation7], 0 }
   0x4   :  { %17 = vsyncpa [#allocation8], 0 }
   0x5   :  { %19 = vsyncpa [#allocation8 + $0x1], 0  ;;  %s1550_s17 = smov 0   ;;  %s1552_s18 = smov 0  }
   0x6   :  { %s1554_s19 = smov 0   ;;  %s1556_s20 = smov 0  }
   0x7 LB: > { %s1571_s21 = sadd.s32 4294967295, %s1470_s20   ;;  %s1294_s22 = sadd.s32 4294967294, %s1470_s20   ;;  %s1470_s20 = sphi %s1556_s20, %s1967_s20   ;;  %s1466_s19 = sphi %s1554_s19, %s1966_s19   ;;  %s1462_s18 = sphi %s1552_s18, %s1965_s18   ;;  %s1458_s17 = sphi %s1550_s17, %s1964_s17  }
   0x8   : > { %s1575_s23 = sadd.s32 1, %s1470_s20   ;;  %s268_s24 = sadd.s32 1, %s1466_s19 }
   0x9   : > { %s265_s25 = ssub.s32 %s1470_s20, %s1575_s23  ;;  %p278_p0 = scmp.ne.s32.totalorder %s1466_s19, %s1462_s18 }
   0xa   : > { %p266_p1 = scmp.eq.s32.totalorder %s265_s25, 0  ;;  %p279_p2 = scmp.eq.s32.totalorder %s1571_s21, 1 }
   0xb   : > { %p284_p3 = scmp.ne.s32.totalorder %s1462_s18, %s1458_s17  ;;  %p285_p4 = scmp.eq.s32.totalorder %s1294_s22, 1 }
   0xc   : > { %s1586_s26 = scalar_select %p266_p1, %s1466_s19, %s268_s24  }
   0xd   : > { %p1588_p5 = por %p279_p2, %p278_p0  ;;  %p1592_p6 = por %p285_p4, %p284_p3 }
   0xe   : > { %p1295_p7 = scmp.ge.s32.totalorder %s1470_s20, 1  ;;  %p292_p8 = scmp.lt.s32.totalorder %s1470_s20, 3 }
   0xf   : > { %s1951_s28 = scalar_select %p1592_p6, 1, 0 }
  0x10   : > { %p1326_p9 = scmp.eq.s32.totalorder %s1571_s21, 0  ;;  %p1599_p10 = pnand %p1295_p7, %p292_p8 }
  0x11   : > { %s1472_s30 = smov [#allocation6]  }
  0x12   : > { %s305_s12 = sshll.u32 %s1472_s30, 4  ;;  %p1318_p11 = pneg %p1599_p10  ;;  %s306_s12 = int_to_ptr.vmem [resolvable:$true] %s305_s12 }
  0x13   : > { %s1391_s13 = scalar_lea.vmem %s306_s12, 128  ;;  %p1399_p3 = scmp.lt.s32.totalorder %s306_s12, %s306_s12 }
  0x14   : > { %p1319_p12 = pnand %p1326_p9, %p1318_p11  ;;  %p1392_p0 = scmp.ne.s32.totalorder %s306_s12, %s1391_s13 }
  0x15   : > { %p1400_p4 = scmp.lt.s32.totalorder %s1391_s13, %s1391_s13 }
  0x16   : > { %p1382_p13 = pneg %p1319_p12 }
  0x17   : > { %p1401_p6 = por %p1400_p4, %p1399_p3 }
  0x18   : > { %p1394_p1 = pnand %p1392_p0, %p1382_p13 }
  0x1a   : > { %p1395_p2 = pneg %p1394_p1 }
  0x1c   : > { %p1402_p7 = pnand %p1401_p6, %p1395_p2 }
  0x1e   : > { %1405 = shalt.err (!%p1402_p7)
}
  0x1f   : > { %s1953_s1 = sld [smem:[#allocation13_spill]] }
  0x21   : > { %353 = sbr.rel (%p1599_p10) target bundleno = 1041 (0x411), region = 64 }
  0x25   : > { %1321 = dma.hbm_to_vmem [thread:$0]  (!%p1319_p12), %s1953_s1, 128, %s306_s12, [#allocation7]  }
  0x26   : > { %1449 = dma.done.wait (%p1326_p9), [#allocation7], 128  }
  0x27   : > { %1451 = vsyncadd (%p1326_p9), [#allocation7], 4294967168  ;;  %p393_p8 = scmp.lt.s32.totalorder %s1571_s21, 1  ;;  %v426_v0 = vlaneseq  ;;  %v1473_v1 = vmov 0.0   ;;  %vm400_vm0 = vcmask 277504   ;;  %s1954_s0 = sld [smem:[#allocation12_spill]] }
  0x28   : > { %398 = vst [vmem:[#allocation2] sm:$0xff] %v1473_v1  ;;  %402 = vst [vmem:[#allocation4] sm:$0xff] %v1473_v1  ;;  %788 = vmatprep.mubr.f32.mxu0 %v1473_v1  ;;  %1179 = vmatprep.mubr.f32.mxu1 %v1473_v1  ;;  %v664_v6 = vld [vmem:[%s1928_s8] sm:$0x3]  ;;  %s1474_s13 = smov 17   ;;  %s1476_s25 = smov 32  }
  0x29   : > { %s394_s16 = scalar_select %p393_p8, %s1571_s21, 1  ;;  %v427_v2 = vshrl.u32 %v426_v0, 7  ;;  %401 = vst.msk [vmem:[#allocation2 + $0x10] sm:$0xff] %vm400_vm0, %v1473_v1  ;;  %404 = vst.msk [vmem:[#allocation4 + $0x10] sm:$0xff] %vm400_vm0, %v1473_v1  ;;  %v604_v9 = vld [vmem:[%s1927_s7] sm:$0x3] }
  0x2a   : > { %v563_v12 = vld [vmem:[%s1928_s8] sm:$0x3]  ;;  %s1477_s12 = smov 18   ;;  %s1936_s24 = smov 2   ;;  %vm418_vm1 = vcmask 1047688   ;;  %vm413_vm2 = vcmask 138240  }
  0x2b   : > { %s1310_s22 = sshll.u32 %s394_s16, 4  ;;  %v1620_v3 = vsub.s32 0, %v427_v2  ;;  %v1625_v4 = vsub.s32 1, %v427_v2  ;;  %s1475_s16 = smov 34   ;;  %v503_v15 = vld [vmem:[%s1927_s7] sm:$0x3] }
  0x2c   : > { %v462_v18 = vld [vmem:[%s1928_s8] sm:$0x3]  ;;  %s1934_s30 = smov 111   ;;  %s1946_s14 = smov 94   ;;  %vm577_vm3 = vcmask 146432   ;;  %vm618_vm4 = vcmask 261120  }
  0x2d   : > { %s397_s29 = scalar_lea.vmem %s1954_s0, %s1310_s22  ;;  %v669_v7 = vrot.slane %v664_v6, %v1620_v3  ;;  %v673_v10 = vrot.slane %v664_v6, %v1625_v4  ;;  %v609_v11 = vrot.slane %v604_v9, %v1620_v3  ;;  %v613_v13 = vrot.slane %v604_v9, %v1625_v4  ;;  %s1938_s22 = smov 16   ;;  %v803_v58 = vld [vmem:[%s1923_s3] sm:$0xff] }
  0x2e   : > { %v1627_v5 = vld [vmem:[%s397_s29] sm:$0xff]  ;;  %v1635_v8 = vld [vmem:[%s397_s29 + $0x8] sm:$0xff]  ;;  %v568_v14 = vrot.slane %v563_v12, %v1620_v3  ;;  %v572_v16 = vrot.slane %v563_v12, %v1625_v4  ;;  %v508_v17 = vrot.slane %v503_v15, %v1620_v3  ;;  %v512_v19 = vrot.slane %v503_v15, %v1625_v4  ;;  %s1932_s29 = smov 95   ;;  %s1942_s15 = smov 96  }
  0x2f   : > { %409 = vrot.lane.b32.xlu0 %v1627_v5, %s1474_s13  ;;  %674 = vrot.lane.b32.xlu1 %v669_v7, %s1475_s16  ;;  %v467_v20 = vrot.slane %v462_v18, %v1620_v3  ;;  %v471_v21 = vrot.slane %v462_v18, %v1625_v4  ;;  %vm517_vm5 = vcmask 130048   ;;  %vm476_vm6 = vcmask 15360   ;;  %v795_v59 = vld [vmem:[%s1922_s2] sm:$0xff] }
  0x30   : > { %v1488_v56 = vmov 0   ;;  %vm694_vm7 = vcmask 769024   ;;  %vm654_vm8 = vcmask 777216   ;;  %vm635_vm9 = vcmask 785408  }
  0x31   : > { %1378 = vset.pattern.permute.xlu0 %v1488_v56  ;;  %1379 = vset.pattern.permute.xlu1 %v1488_v56  ;;  %vm594_vm10 = vcmask 900096   ;;  %vm553_vm11 = vcmask 908288   ;;  %vm534_vm12 = vcmask 916480   ;;  %vm493_vm13 = vcmask 1031168  }
  0x32   : > { %vm452_vm14 = vcmask 1039360   ;;  %vm720_vm15 = vcmask 588800  }
  0x33   : > { %411 = vrot.lane.b32.xlu0 %v1635_v8, %s1474_s13  ;;  %676 = vrot.lane.b32.xlu1 %v673_v10, %s1475_s16 }
  0x37   : > { %614 = vrot.lane.b32.xlu0 %v609_v11, %s1476_s25  ;;  %616 = vrot.lane.b32.xlu1 %v613_v13, %s1476_s25 }
  0x3b   : > { %573 = vrot.lane.b32.xlu0 %v568_v14, %s1477_s12  ;;  %575 = vrot.lane.b32.xlu1 %v572_v16, %s1477_s12 }
  0x3f   : > { %513 = vrot.lane.b32.xlu0 %v508_v17, %s1938_s22  ;;  %515 = vrot.lane.b32.xlu1 %v512_v19, %s1938_s22  ;;  %s1487_s22 = smov 127  }
  0x43   : > { %472 = vrot.lane.b32.xlu0 %v467_v20, %s1936_s24  ;;  %474 = vrot.lane.b32.xlu1 %v471_v21, %s1936_s24  ;;  %s1486_s24 = smov 126  }
  0xa1   : > { %v410_v22 = vpop.permute.xlu0 %409  ;;  %v675_v23 = vpop.permute.xlu1 %674 }
  0xa2   : > { %419 = vst.msk [vmem:[#allocation2] sm:$0xff] %vm418_vm1, %v410_v22 }
  0xa5   : > { %v412_v24 = vpop.permute.xlu0 %411  ;;  %v677_v27 = vpop.permute.xlu1 %676 }
  0xa6   : > { %v1672_v25 = vsel %vm413_vm2, %v410_v22, %v412_v24  ;;  %421 = vst.msk [vmem:[#allocation2 + $0x10] sm:$0xff] %vm413_vm2, %v412_v24  ;;  %v678_v45 = vsel %vm400_vm0, %v675_v23, %v677_v27 }
  0xa7   : > { %v683_v47 = vmul.f32 %v678_v45, %v1672_v25 }
  0xa9   : > { %v1675_v26 = vld [vmem:[#allocation2] sm:$0xff]  ;;  %v617_v29 = vpop.permute.xlu1 %616  ;;  %v615_v30 = vpop.permute.xlu0 %614 }
  0xaa   : > { %648 = vrot.lane.b32.xlu1 %v1675_v26, %s1932_s29  ;;  %v682_v34 = vmul.f32 %v675_v23, %v1675_v26  ;;  %v623_v37 = vmul.f32 %v1675_v26, %v615_v30  ;;  %v619_v49 = vsel %vm618_vm4, %v615_v30, %v617_v29 }
  0xab   : > { %v624_v51 = vmul.f32 %v619_v49, %v1672_v25 }
  0xad   : > { %v1679_v28 = vld [vmem:[#allocation2 + $0x10] sm:$0xff]  ;;  %v576_v32 = vpop.permute.xlu1 %575  ;;  %v574_v33 = vpop.permute.xlu0 %573 }
  0xae   : > { %652 = vrot.lane.b32.xlu0 %v1679_v28, %s1932_s29  ;;  %551 = vrot.lane.b32.xlu1 %v1679_v28, %s1934_s30  ;;  %v684_v31 = vmul.f32 %v677_v27, %v1679_v28  ;;  %v625_v35 = vmul.f32 %v1679_v28, %v617_v29  ;;  %v582_v38 = vmul.f32 %v1675_v26, %v574_v33 }
  0xaf   : > { %v584_v40 = vmul.f32 %v1679_v28, %v576_v32  ;;  %v578_v46 = vsel %vm577_vm3, %v574_v33, %v576_v32 }
  0xb0   : > { %v583_v48 = vmul.f32 %v578_v46, %v1672_v25 }
  0xb1   : > { %v516_v36 = vpop.permute.xlu1 %515  ;;  %v514_v39 = vpop.permute.xlu0 %513 }
  0xb2   : > { %650 = vrot.lane.b32.xlu1 %v1672_v25, %s1932_s29  ;;  %547 = vrot.lane.b32.xlu0 %v1675_v26, %s1934_s30  ;;  %s1944_s29 = smov 110   ;;  %v522_v41 = vmul.f32 %v1675_v26, %v514_v39  ;;  %v524_v43 = vmul.f32 %v1679_v28, %v516_v36  ;;  %v518_v50 = vsel %vm517_vm5, %v514_v39, %v516_v36 }
  0xb3   : > { %v523_v52 = vmul.f32 %v518_v50, %v1672_v25 }
  0xb5   : > { %v475_v42 = vpop.permute.xlu1 %474  ;;  %v473_v53 = vpop.permute.xlu0 %472 }
  0xb6   : > { %692 = vrot.lane.b32.xlu1 %v684_v31, %s1946_s14  ;;  %549 = vrot.lane.b32.xlu0 %v1672_v25, %s1934_s30  ;;  %s1940_s30 = smov 112   ;;  %v483_v44 = vmul.f32 %v1679_v28, %v475_v42  ;;  %v481_v54 = vmul.f32 %v1675_v26, %v473_v53  ;;  %v477_v55 = vsel %vm476_vm6, %v473_v53, %v475_v42 }
  0xb7   : > { %v482_v57 = vmul.f32 %v477_v55, %v1672_v25 }
  0xba   : > { %633 = vrot.lane.b32.xlu1 %v625_v35, %s1942_s15  ;;  %688 = vrot.lane.b32.xlu0 %v682_v34, %s1946_s14  ;;  %v424_v34 = vld [vmem:[%s1927_s7] sm:$0x3] }
  0xbb   : > { %v433_v39 = vrot.slane %v424_v34, %v1625_v4 }
  0xbd   : > { %v437_v45 = vmul.f32 %v433_v39, %v1672_v25 }
  0xbe   : > { %588 = vrot.lane.b32.xlu1 %v582_v38, %s1944_s29  ;;  %629 = vrot.lane.b32.xlu0 %v623_v37, %s1942_s15 }
  0xc2   : > { %592 = vrot.lane.b32.xlu0 %v584_v40, %s1944_s29  ;;  %528 = vrot.lane.b32.xlu1 %v522_v41, %s1940_s30  ;;  %v429_v41 = vrot.slane %v424_v34, %v1620_v3 }
  0xc4   : > { %v436_v46 = vmul.f32 %v1675_v26, %v429_v41 }
  0xc6   : > { %532 = vrot.lane.b32.xlu0 %v524_v43, %s1940_s30  ;;  %491 = vrot.lane.b32.xlu1 %v483_v44, %s1486_s24 }
  0xca   : > { %690 = vrot.lane.b32.xlu0 %v683_v47, %s1946_s14  ;;  %590 = vrot.lane.b32.xlu1 %v583_v48, %s1944_s29  ;;  %v701_v47 = vld [vmem:[#allocation6] sm:$0xff]  ;;  %s1955_s14 = smov 16   ;;  %s1959_s29 = smov 94  }
  0xce   : > { %631 = vrot.lane.b32.xlu0 %v624_v51, %s1942_s15  ;;  %530 = vrot.lane.b32.xlu1 %v523_v52, %s1940_s30  ;;  %s1958_s15 = smov 95   ;;  %s1961_s30 = smov 96  }
  0xd2   : > { %448 = vrot.lane.b32.xlu1 %v1672_v25, %s1487_s22  ;;  %487 = vrot.lane.b32.xlu0 %v481_v54, %s1486_s24  ;;  %v1057_v25 = vld [vmem:[%s1930_s10] sm:$0x3] }
  0xd6   : > { %489 = vrot.lane.b32.xlu0 %v482_v57, %s1486_s24  ;;  %446 = vrot.lane.b32.xlu1 %v1675_v26, %s1487_s22  ;;  %v1062_v57 = vrot.slane %v1057_v25, %v1620_v3 }
  0xda   : > { %450 = vrot.lane.b32.xlu0 %v1679_v28, %s1487_s22  ;;  %806 = vperm.xlu1 %1379, %v803_v58   ;;  %v1000_v58 = vld [vmem:[%s1929_s9] sm:$0x3] }
  0xde   : > { %798 = vperm.xlu0 %1378, %v795_v59   ;;  %v1066_v59 = vrot.slane %v1057_v25, %v1625_v4 }
 0x11c   : > { %v649_v60 = vpop.permute.xlu1 %648 }
 0x120   : > { %v653_v61 = vpop.permute.xlu0 %652  ;;  %v552_v62 = vpop.permute.xlu1 %551 }
 0x124   : > { %v651_v63 = vpop.permute.xlu1 %650  ;;  %v548_v0 = vpop.permute.xlu0 %547 }
 0x125   : > { %v656_v19 = vsel %vm654_vm8, %v651_v63, %v653_v61  ;;  %v655_v22 = vsel %vm654_vm8, %v649_v60, %v651_v63  ;;  %v1005_v60 = vrot.slane %v1000_v58, %v1620_v3  ;;  %v961_v61 = vld [vmem:[%s1930_s10] sm:$0x3] }
 0x126   : > { %v966_v63 = vrot.slane %v961_v61, %v1620_v3 }
 0x128   : > { %v693_v1 = vpop.permute.xlu1 %692  ;;  %v550_v2 = vpop.permute.xlu0 %549 }
 0x129   : > { %v555_v31 = vsel %vm553_vm11, %v550_v2, %v552_v62  ;;  %v554_v32 = vsel %vm553_vm11, %v548_v0, %v550_v2  ;;  %v1009_v62 = vrot.slane %v1000_v58, %v1625_v4  ;;  %v904_v0 = vld [vmem:[%s1929_s9] sm:$0x3] }
 0x12a   : > { %v909_v2 = vrot.slane %v904_v0, %v1620_v3 }
 0x12c   : > { %v634_v6 = vpop.permute.xlu1 %633  ;;  %v689_v7 = vpop.permute.xlu0 %688 }
 0x130   : > { %v589_v9 = vpop.permute.xlu1 %588  ;;  %v630_v10 = vpop.permute.xlu0 %629 }
 0x134   : > { %v593_v11 = vpop.permute.xlu0 %592  ;;  %v529_v12 = vpop.permute.xlu1 %528 }
 0x138   : > { %v533_v13 = vpop.permute.xlu0 %532  ;;  %v492_v14 = vpop.permute.xlu1 %491 }
 0x13c   : > { %v691_v15 = vpop.permute.xlu0 %690  ;;  %v591_v16 = vpop.permute.xlu1 %590 }
 0x13d   : > { %v696_v17 = vsel %vm694_vm7, %v691_v15, %v693_v1  ;;  %v695_v18 = vsel %vm694_vm7, %v689_v7, %v691_v15  ;;  %v596_v27 = vsel %vm594_vm10, %v591_v16, %v593_v11  ;;  %v595_v29 = vsel %vm594_vm10, %v589_v9, %v591_v16 }
 0x13e   : > { %738 = vmatprep.subr.mxu0 %v696_v17  ;;  %v970_v1 = vrot.slane %v961_v61, %v1625_v4  ;;  %v913_v7 = vrot.slane %v904_v0, %v1625_v4 }
 0x13f   : > { %739 = vmatpush1.msra.mxu0 %v695_v18 }
 0x140   : > { %740 = vmatprep.subr.mxu0 %v656_v19  ;;  %v632_v20 = vpop.permute.xlu0 %631  ;;  %v531_v21 = vpop.permute.xlu1 %530 }
 0x141   : > { %741 = vmatpush1.msra.mxu0 %v655_v22  ;;  %v637_v23 = vsel %vm635_vm9, %v632_v20, %v634_v6  ;;  %v636_v24 = vsel %vm635_vm9, %v630_v10, %v632_v20  ;;  %v536_v33 = vsel %vm534_vm12, %v531_v21, %v533_v13  ;;  %v535_v36 = vsel %vm534_vm12, %v529_v12, %v531_v21  ;;  %v865_v6 = vld [vmem:[%s1930_s10] sm:$0x3] }
 0x142   : > { %742 = vmatprep.subr.mxu0 %v637_v23  ;;  %v870_v9 = vrot.slane %v865_v6, %v1620_v3  ;;  %v874_v10 = vrot.slane %v865_v6, %v1625_v4 }
 0x143   : > { %743 = vmatpush1.msra.mxu0 %v636_v24 }
 0x144   : > { %744 = vmatprep.subr.mxu0 %v596_v27  ;;  %v488_v28 = vpop.permute.xlu0 %487  ;;  %v449_v30 = vpop.permute.xlu1 %448 }
 0x145   : > { %745 = vmatpush1.msra.mxu0 %v595_v29 }
 0x146   : > { %746 = vmatprep.subr.mxu0 %v555_v31 }
 0x147   : > { %747 = vmatpush1.msra.mxu0 %v554_v32 }
 0x148   : > { %748 = vmatprep.subr.mxu0 %v536_v33  ;;  %v490_v35 = vpop.permute.xlu0 %489  ;;  %v447_v40 = vpop.permute.xlu1 %446 }
 0x149   : > { %749 = vmatpush1.msra.mxu0 %v535_v36  ;;  %v495_v37 = vsel %vm493_vm13, %v490_v35, %v492_v14  ;;  %v494_v38 = vsel %vm493_vm13, %v488_v28, %v490_v35  ;;  %v453_v44 = vsel %vm452_vm14, %v447_v40, %v449_v30 }
 0x14a   : > { %750 = vmatprep.subr.mxu0 %v495_v37 }
 0x14b   : > { %751 = vmatpush1.msra.mxu0 %v494_v38 }
 0x14c   : > { %v451_v42 = vpop.permute.xlu0 %450 }
 0x14d   : > { %v454_v43 = vsel %vm452_vm14, %v449_v30, %v451_v42 }
 0x14e   : > { %752 = vmatprep.subr.mxu0 %v454_v43 }
 0x14f   : > { %753 = vmatpush1.msra.mxu0 %v453_v44 }
 0x150   : > { %754 = vmatprep.subr.mxu0 %v437_v45 }
 0x151   : > { %755 = vmatpush1.msra.mxu0 %v436_v46 }
 0x152   : > { %1303 = vmatmul.mubr.msk.f32.vlgmr.msra.gmra.mxu0 %vm720_vm15, %v701_v47 }
 0x155   : > { %v807_v50 = vpop.permute.xlu1 %806 }
 0x159   : > { %v799_v48 = vpop.permute.xlu0 %798 }
 0x212   : > { %v790_v49 = vpop.f32.mrf.mxu0 }
 0x213   : > { %v801_v51 = vmul.f32 %v799_v48, %v790_v49  ;;  %v1194_v49 = vld [vmem:[%s1926_s6] sm:$0xff] }
 0x214   : > { %v792_v52 = vpop.f32.mrf.mxu0 }
 0x215   : > { %v809_v53 = vadd.f32 %v807_v50, %v801_v51  ;;  %v802_v54 = vmul.f32 %v799_v48, %v792_v52  ;;  %v1186_v48 = vld [vmem:[%s1925_s5] sm:$0xff] }
 0x217   : > { %v811_v55 = vmax.f32 %v809_v53, 0.0  ;;  %v810_v56 = vadd.f32 %v807_v50, %v802_v54 }
 0x219   : > { %v812_v26 = vmax.f32 %v810_v56, 0.0  ;;  %815 = vrot.lane.b32.xlu1 %v811_v55, %s1474_s13 }
 0x21b   : > { %817 = vrot.lane.b32.xlu0 %v812_v26, %s1474_s13  ;;  %s1960_s13 = smov 110  }
 0x21d   : > { %1067 = vrot.lane.b32.xlu1 %v1062_v57, %s1475_s16 }
 0x21f   : > { %1069 = vrot.lane.b32.xlu0 %v1066_v59, %s1475_s16  ;;  %s1962_s16 = smov 112  }
 0x221   : > { %1010 = vrot.lane.b32.xlu1 %v1005_v60, %s1476_s25 }
 0x223   : > { %1012 = vrot.lane.b32.xlu0 %v1009_v62, %s1476_s25  ;;  %s1956_s25 = smov 2  }
 0x225   : > { %971 = vrot.lane.b32.xlu1 %v966_v63, %s1477_s12 }
 0x227   : > { %973 = vrot.lane.b32.xlu0 %v970_v1, %s1477_s12  ;;  %s1957_s12 = smov 111  }
 0x229   : > { %914 = vrot.lane.b32.xlu1 %v909_v2, %s1955_s14 }
 0x22b   : > { %916 = vrot.lane.b32.xlu0 %v913_v7, %s1955_s14  ;;  %s1311_s14 = sshll.u32 %s1571_s21, 8  ;;  %s1489_s21 = smov [#allocation9]  }
 0x22d   : > { %875 = vrot.lane.b32.xlu1 %v870_v9, %s1956_s25 }
 0x22f   : > { %877 = vrot.lane.b32.xlu0 %v874_v10, %s1956_s25 }
 0x28b   : > { %v816_v11 = vpop.permute.xlu1 %815 }
 0x28c   : > { %823 = vst.msk [vmem:[#allocation4] sm:$0xff] %vm418_vm1, %v816_v11 }
 0x28d   : > { %v818_v12 = vpop.permute.xlu0 %817 }
 0x28e   : > { %v1801_v13 = vsel %vm413_vm2, %v816_v11, %v818_v12  ;;  %825 = vst.msk [vmem:[#allocation4 + $0x10] sm:$0xff] %vm413_vm2, %v818_v12 }
 0x28f   : > { %v1068_v14 = vpop.permute.xlu1 %1067 }
 0x291   : > { %v1070_v17 = vpop.permute.xlu0 %1069 }
 0x292   : > { %v1071_v33 = vsel %vm400_vm0, %v1068_v14, %v1070_v17 }
 0x293   : > { %v1804_v15 = vld [vmem:[#allocation4] sm:$0xff]  ;;  %v1011_v16 = vpop.permute.xlu1 %1010  ;;  %v1076_v36 = vmul.f32 %v1071_v33, %v1801_v13 }
 0x294   : > { %946 = vrot.lane.b32.xlu1 %v1804_v15, %s1957_s12  ;;  %1042 = vrot.lane.b32.xlu0 %v1804_v15, %s1958_s15  ;;  %v1075_v18 = vmul.f32 %v1068_v14, %v1804_v15  ;;  %v1018_v24 = vmul.f32 %v1804_v15, %v1011_v16 }
 0x295   : > { %v1056_v21 = vld [vmem:[#allocation4 + $0x10] sm:$0xff]  ;;  %v1013_v22 = vpop.permute.xlu0 %1012 }
 0x296   : > { %v1077_v31 = vmul.f32 %v1070_v17, %v1056_v21  ;;  %v1020_v34 = vmul.f32 %v1056_v21, %v1013_v22  ;;  %v1014_v37 = vsel %vm618_vm4, %v1011_v16, %v1013_v22 }
 0x297   : > { %v972_v19 = vpop.permute.xlu1 %971  ;;  %v1019_v40 = vmul.f32 %v1014_v37, %v1801_v13  ;;  %v1093_v37 = vld [vmem:[%s1924_s4] sm:$0xff] }
 0x298   : > { %v979_v20 = vmul.f32 %v1804_v15, %v972_v19  ;;  %1081 = vrot.lane.b32.xlu1 %v1075_v18, %s1959_s29 }
 0x299   : > { %v974_v28 = vpop.permute.xlu0 %973 }
 0x29a   : > { %985 = vrot.lane.b32.xlu0 %v979_v20, %s1960_s13  ;;  %v981_v29 = vmul.f32 %v1056_v21, %v974_v28  ;;  %v975_v39 = vsel %vm577_vm3, %v972_v19, %v974_v28 }
 0x29b   : > { %v915_v23 = vpop.permute.xlu1 %914  ;;  %v980_v42 = vmul.f32 %v975_v39, %v1801_v13 }
 0x29c   : > { %1046 = vrot.lane.b32.xlu1 %v1056_v21, %s1958_s15  ;;  %v922_v27 = vmul.f32 %v1804_v15, %v915_v23 }
 0x29d   : > { %v917_v30 = vpop.permute.xlu0 %916 }
 0x29e   : > { %950 = vrot.lane.b32.xlu0 %v1056_v21, %s1957_s12  ;;  %v924_v32 = vmul.f32 %v1056_v21, %v917_v30  ;;  %v918_v43 = vsel %vm517_vm5, %v915_v23, %v917_v30  ;;  %v828_v23 = vld [vmem:[%s1929_s9] sm:$0x3] }
 0x29f   : > { %v876_v41 = vpop.permute.xlu1 %875  ;;  %v923_v46 = vmul.f32 %v918_v43, %v1801_v13 }
 0x2a0   : > { %1024 = vrot.lane.b32.xlu1 %v1018_v24, %s1961_s30  ;;  %v883_v44 = vmul.f32 %v1804_v15, %v876_v41 }
 0x2a1   : > { %v878_v35 = vpop.permute.xlu0 %877 }
 0x2a2   : > { %928 = vrot.lane.b32.xlu0 %v922_v27, %s1962_s16  ;;  %v885_v38 = vmul.f32 %v1056_v21, %v878_v35  ;;  %v879_v45 = vsel %vm476_vm6, %v876_v41, %v878_v35 }
 0x2a3   : > { %v884_v47 = vmul.f32 %v879_v45, %v1801_v13 }
 0x2a4   : > { %948 = vrot.lane.b32.xlu1 %v1801_v13, %s1957_s12 }
 0x2a6   : > { %1044 = vrot.lane.b32.xlu0 %v1801_v13, %s1958_s15 }
 0x2a8   : > { %989 = vrot.lane.b32.xlu1 %v981_v29, %s1960_s13  ;;  %v837_v29 = vrot.slane %v828_v23, %v1625_v4 }
 0x2aa   : > { %1085 = vrot.lane.b32.xlu0 %v1077_v31, %s1959_s29  ;;  %v833_v31 = vrot.slane %v828_v23, %v1620_v3  ;;  %v841_v35 = vmul.f32 %v837_v29, %v1801_v13 }
 0x2ac   : > { %932 = vrot.lane.b32.xlu1 %v924_v32, %s1962_s16 }
 0x2ae   : > { %1028 = vrot.lane.b32.xlu0 %v1020_v34, %s1961_s30 }
 0x2b0   : > { %1083 = vrot.lane.b32.xlu1 %v1076_v36, %s1959_s29  ;;  %v840_v36 = vmul.f32 %v1804_v15, %v833_v31 }
 0x2b2   : > { %893 = vrot.lane.b32.xlu0 %v885_v38, %s1486_s24 }
 0x2b4   : > { %1026 = vrot.lane.b32.xlu1 %v1019_v40, %s1961_s30  ;;  %s390_s30 = sand.u32 1, %s1462_s18  }
 0x2b5   : > { %s1209_s29 = scalar_lea.sflag [#allocation8], %s390_s30 }
 0x2b6   : > { %987 = vrot.lane.b32.xlu0 %v980_v42, %s1960_s13 }
 0x2b8   : > { %889 = vrot.lane.b32.xlu1 %v883_v44, %s1486_s24 }
 0x2ba   : > { %930 = vrot.lane.b32.xlu0 %v923_v46, %s1962_s16  ;;  %s1300_s16 = sshll.u32 %s390_s30, 4 }
 0x2bb   : > { %s392_s25 = scalar_lea.vmem [#allocation9], %s1300_s16  ;;  %s1410_s16 = sshll.u32 %s1489_s21, 4  ;;  %s1411_s16 = int_to_ptr.vmem [resolvable:$false] %s1410_s16 }
 0x2bc   : > { %891 = vrot.lane.b32.xlu1 %v884_v47, %s1486_s24  ;;  %s1223_s12 = sshll.u32 %s392_s25, 4  ;;  %s1221_s24 = scalar_lea.hbm %s1931_s11, %s1311_s14  ;;  %s1224_s12 = int_to_ptr.vmem [resolvable:$true] %s1223_s12 }
 0x2bd   : > { %s1406_s13 = scalar_lea.vmem %s1224_s12, 256  ;;  %s1412_s0 = scalar_lea.vmem %s1411_s16, 512 }
 0x2be   : > { %852 = vrot.lane.b32.xlu0 %v1801_v13, %s1487_s22  ;;  %p1407_p6 = scmp.ne.s32.totalorder %s1224_s12, %s1406_s13  ;;  %p1413_p11 = scmp.lt.s32.totalorder %s1224_s12, %s1411_s16 }
 0x2bf   : > { %p1414_p12 = scmp.lt.s32.totalorder %s1412_s0, %s1406_s13 }
 0x2c0   : > { %854 = vrot.lane.b32.xlu1 %v1056_v21, %s1487_s22  ;;  %p1408_p9 = pnand %p1407_p6, %p1588_p5 }
 0x2c1   : > { %p1415_p13 = por %p1414_p12, %p1413_p11 }
 0x2c2   : > { %850 = vrot.lane.b32.xlu0 %v1804_v15, %s1487_s22  ;;  %p1409_p10 = pneg %p1408_p9 }
 0x2c4   : > { %1189 = vperm.xlu1 %1379, %v1186_v48   ;;  %p1416_p0 = pnand %p1415_p13, %p1409_p10 }
 0x2c6   : > { %1197 = vperm.xlu0 %1378, %v1194_v49  }
 0x306   : > { %v947_v50 = vpop.permute.xlu1 %946  ;;  %v1043_v51 = vpop.permute.xlu0 %1042 }
 0x30a   : > { %v1082_v52 = vpop.permute.xlu1 %1081 }
 0x30c   : > { %v986_v53 = vpop.permute.xlu0 %985 }
 0x30e   : > { %v1047_v54 = vpop.permute.xlu1 %1046 }
 0x310   : > { %v951_v25 = vpop.permute.xlu0 %950 }
 0x312   : > { %v1025_v55 = vpop.permute.xlu1 %1024 }
 0x314   : > { %v929_v56 = vpop.permute.xlu0 %928 }
 0x316   : > { %v949_v26 = vpop.permute.xlu1 %948 }
 0x317   : > { %v953_v17 = vsel %vm553_vm11, %v949_v26, %v951_v25  ;;  %v952_v19 = vsel %vm553_vm11, %v947_v50, %v949_v26 }
 0x318   : > { %v1045_v57 = vpop.permute.xlu0 %1044 }
 0x319   : > { %v1049_v2 = vsel %vm654_vm8, %v1045_v57, %v1047_v54  ;;  %v1048_v7 = vsel %vm654_vm8, %v1043_v51, %v1045_v57 }
 0x31a   : > { %v990_v58 = vpop.permute.xlu1 %989 }
 0x31c   : > { %v1086_v59 = vpop.permute.xlu0 %1085 }
 0x31e   : > { %v933_v60 = vpop.permute.xlu1 %932 }
 0x320   : > { %v1029_v61 = vpop.permute.xlu0 %1028 }
 0x322   : > { %v1084_v62 = vpop.permute.xlu1 %1083 }
 0x323   : > { %v1088_v63 = vsel %vm694_vm7, %v1084_v62, %v1086_v59  ;;  %v1087_v0 = vsel %vm694_vm7, %v1082_v52, %v1084_v62 }
 0x324   : > { %1129 = vmatprep.subr.mxu1 %v1088_v63  ;;  %v894_v1 = vpop.permute.xlu0 %893 }
 0x325   : > { %1130 = vmatpush1.msra.mxu1 %v1087_v0 }
 0x326   : > { %v1027_v6 = vpop.permute.xlu1 %1026  ;;  %1131 = vmatprep.subr.mxu1 %v1049_v2 }
 0x327   : > { %1132 = vmatpush1.msra.mxu1 %v1048_v7  ;;  %v1031_v9 = vsel %vm635_vm9, %v1027_v6, %v1029_v61  ;;  %v1030_v10 = vsel %vm635_vm9, %v1025_v55, %v1027_v6 }
 0x328   : > { %1133 = vmatprep.subr.mxu1 %v1031_v9  ;;  %v988_v11 = vpop.permute.xlu0 %987 }
 0x329   : > { %1134 = vmatpush1.msra.mxu1 %v1030_v10  ;;  %v992_v12 = vsel %vm594_vm10, %v988_v11, %v990_v58  ;;  %v991_v14 = vsel %vm594_vm10, %v986_v53, %v988_v11 }
 0x32a   : > { %v890_v16 = vpop.permute.xlu1 %889  ;;  %1135 = vmatprep.subr.mxu1 %v992_v12 }
 0x32b   : > { %1136 = vmatpush1.msra.mxu1 %v991_v14 }
 0x32c   : > { %1137 = vmatprep.subr.mxu1 %v953_v17  ;;  %v931_v18 = vpop.permute.xlu0 %930 }
 0x32d   : > { %1138 = vmatpush1.msra.mxu1 %v952_v19  ;;  %v935_v20 = vsel %vm534_vm12, %v931_v18, %v933_v60  ;;  %v934_v21 = vsel %vm534_vm12, %v929_v56, %v931_v18 }
 0x32e   : > { %v892_v22 = vpop.permute.xlu1 %891  ;;  %1139 = vmatprep.subr.mxu1 %v935_v20 }
 0x32f   : > { %1140 = vmatpush1.msra.mxu1 %v934_v21  ;;  %v896_v24 = vsel %vm493_vm13, %v892_v22, %v894_v1  ;;  %v895_v27 = vsel %vm493_vm13, %v890_v16, %v892_v22 }
 0x330   : > { %1141 = vmatprep.subr.mxu1 %v896_v24  ;;  %v853_v28 = vpop.permute.xlu0 %852 }
 0x331   : > { %1142 = vmatpush1.msra.mxu1 %v895_v27 }
 0x332   : > { %v855_v30 = vpop.permute.xlu1 %854 }
 0x333   : > { %v857_v32 = vsel %vm452_vm14, %v853_v28, %v855_v30 }
 0x334   : > { %1143 = vmatprep.subr.mxu1 %v857_v32  ;;  %v851_v33 = vpop.permute.xlu0 %850 }
 0x335   : > { %v856_v34 = vsel %vm452_vm14, %v851_v33, %v853_v28 }
 0x336   : > { %1144 = vmatpush1.msra.mxu1 %v856_v34 }
 0x337   : > { %1145 = vmatprep.subr.mxu1 %v841_v35 }
 0x338   : > { %1146 = vmatpush1.msra.mxu1 %v840_v36 }
 0x339   : > { %1304 = vmatmul.mubr.msk.f32.vlgmr.msra.gmra.mxu1 %vm720_vm15, %v1093_v37 }
 0x33f   : > { %v1190_v3 = vpop.permute.xlu1 %1189 }
 0x341   : > { %v1198_v39 = vpop.permute.xlu0 %1197 }
 0x3f9   : > { %v1181_v4 = vpop.f32.mrf.mxu1 }
 0x3fa   : > { %v1192_v38 = vmul.f32 %v1190_v3, %v1181_v4 }
 0x3fb   : > { %v1183_v40 = vpop.f32.mrf.mxu1 }
 0x3fc   : > { %v1200_v13 = vadd.f32 %v1198_v39, %v1192_v38  ;;  %v1193_v41 = vmul.f32 %v1190_v3, %v1183_v40 }
 0x3fe   : > { %v1202_v15 = vadd.f32 %v1200_v13, %v1627_v5  ;;  %v1201_v42 = vadd.f32 %v1198_v39, %v1193_v41 }
 0x400   : > { %v1204_v43 = vmax.f32 %v1202_v15, 0.0  ;;  %v1203_v44 = vadd.f32 %v1201_v42, %v1635_v8 }
 0x402   : > { %v1205_v45 = vmax.f32 %v1203_v44, 0.0  ;;  %1206 = vst [vmem:[%s392_s25] sm:$0xff] %v1204_v43 }
 0x404   : > { %1207 = vst [vmem:[%s392_s25 + $0x8] sm:$0xff] %v1205_v45 }
 0x405   : > { %1419 = shalt.err (!%p1416_p0)
}
 0x406   : > { %s1420_s1 = scalar_lea.hbm %s1221_s24, 256  ;;  %s1424_s25 = scalar_lea.hbm %s1931_s11, 512 }
 0x407   : > { %p1421_p1 = scmp.ne.s32.totalorder %s1221_s24, %s1420_s1  ;;  %p1425_p4 = scmp.lt.s32.totalorder %s1221_s24, %s1931_s11 }
 0x408   : > { %p1426_p7 = scmp.lt.s32.totalorder %s1424_s25, %s1420_s1 }
 0x409   : > { %p1422_p2 = pnand %p1421_p1, %p1588_p5 }
 0x40a   : > { %p1427_p8 = por %p1426_p7, %p1425_p4 }
 0x40b   : > { %p1423_p3 = pneg %p1422_p2 }
 0x40d   : > { %p1428_p6 = pnand %p1427_p8, %p1423_p3 }
 0x40f   : > { %1431 = shalt.err (!%p1428_p6)
}
 0x410   : > { %1316 = dma.vmem_to_hbm [thread:$0]  (%p1588_p5), %s1224_s12, 256, %s1221_s24, %s1209_s29  }
 0x411 PF: > { %p1328_p9 = scmp.ge.s32.totalorder %s1470_s20, 2  ;;  %s1235_s0 = sand.u32 1, %s1458_s17  }
 0x412   : > { %p1963_p10 = scmp.ne.s32.totalorder %s1951_s28, 0  ;;  %s1236_s13 = scalar_lea.sflag [#allocation8], %s1235_s0 }
 0x414   : > { %p1323_p11 = pnand %p1328_p9, %p1963_p10 }
 0x416   : > { %p1324_p12 = pneg %p1323_p11 }
 0x418   : > { %1453 = dma.done.wait (%p1324_p12), %s1236_s13, 256  }
 0x419   : > { %1455 = vsyncadd (%p1324_p12), %s1236_s13, 4294967040  ;;  %p22_p13 = scmp.ge.s32.totalorder %s1575_s23, 4   ;;  %s1964_s17 = smov %s1462_s18 }
 0x41a   : > { %s1965_s18 = smov %s1466_s19  ;;  %s1966_s19 = smov %s1586_s26 }
 0x41b   : > { %s1967_s20 = smov %s1575_s23  ;;  %24 = sbr.rel (!%p22_p13) target bundleno = 7 (0x7), region = 104 }
 0x420   :  { %1241 = vsyncpa [#allocation7], 1 }
 0x421   :  { %1243 = vsyncpa [#allocation7 + $0x1], 1 }
 0x422   :  { %1244 = vsyncpa [#allocation8], 1 }
 0x423   :  { %1246 = vsyncpa [#allocation8 + $0x1], 1 }

</bundles_post_ra>
